<compile_context>
chip_gen: v6e
topology: v6e:2x2x1
jax: 0.10.0
libtpu: 0.0.40
codegen_flags: <defaults>
</compile_context>

<pallas_src>
import math

import jax
import jax.numpy as jnp
from jax.experimental import pallas as pl
from jax.experimental.pallas import tpu as pltpu

# ----------------------------- hyperparameters -----------------------------
D_MODEL = 32      # embedding width
SEQ = 8           # sequence length of the example input
BATCH = 2
MAX_LEN = 5000    # PyTorch default
DROPOUT_P = 0.1   # identity at eval time


# ------------------------------ Pallas kernel ------------------------------
def positional_encoding_kernel(x_ref, pe_ref, out_ref):
    # x_ref  : (B, TS*D)  activations   (batch on sublanes, seq*d_model on lanes)
    # pe_ref : (1, TS*D)  positional encodings for this seq tile
    # Sublane broadcast of pe over the batch axis; lane-dense unmasked stores.
    out_ref[...] = (x_ref[...] + pe_ref[...]).astype(out_ref.dtype)
    # TODO(synk): training-mode dropout (p=0.1) not implemented; eval-mode forward => identity.


# ------------------------------ buffer (init) ------------------------------
def make_pe_buffer(d_model: int, max_len: int) -> jnp.ndarray:
    """Same construction as the PyTorch __init__ registered buffer, shape (max_len, d_model)."""
    position = jnp.arange(max_len, dtype=jnp.float32)[:, None]               # (max_len, 1)
    div_term = jnp.exp(
        jnp.arange(0, d_model, 2, dtype=jnp.float32) * (-math.log(10000.0) / d_model)
    )                                                                        # (d_model//2,)
    ang = position * div_term                                                # (max_len, d_model//2)
    pe = jnp.zeros((max_len, d_model), jnp.float32)
    pe = pe.at[:, 0::2].set(jnp.sin(ang))
    pe = pe.at[:, 1::2].set(jnp.cos(ang))
    return pe


# ----------------------------- tile selection -------------------------------
def _choose_seq_tile(S: int, B: int, D: int, itemsize: int) -> int:
    """Seq tile TS such that (a) TS*D is a multiple of 128 lanes, (b) TS divides S,
    (c) the x block stays near ~2 MiB (double-buffered working set is VMEM-safe
    even on v7x's 64 MiB)."""
    granule = 128 // math.gcd(128, D)          # smallest TS with (TS*D) % 128 == 0
    if S % granule != 0:
        return S                               # single whole block (last dim == full array dim)
    target_elems = (2 << 20) // max(1, B * itemsize)   # ~2 MiB of x per block
    ts = granule
    while (ts * 2) * D <= target_elems and S % (ts * 2) == 0:
        ts *= 2
    return min(ts, S)


# -------------------------------- wrapper ----------------------------------
@jax.jit
def positional_encoding(x, pe_buffer):
    S, B, D = x.shape
    max_len = pe_buffer.shape[0]
    if S > max_len:
        raise ValueError(f"seq_len {S} exceeds max_len {max_len}")

    # Lane-dense slabs: batch on sublanes, flattened (seq, d_model) on lanes.
    x2 = jnp.transpose(x, (1, 0, 2)).reshape(B, S * D)
    pe2 = pe_buffer[:S].reshape(1, S * D).astype(x.dtype)

    ts = _choose_seq_tile(S, B, D, x.dtype.itemsize)
    blk = ts * D
    grid = (S // ts,)

    out2 = pl.pallas_call(
        positional_encoding_kernel,
        out_shape=jax.ShapeDtypeStruct((B, S * D), x.dtype),
        grid=grid,
        in_specs=[
            pl.BlockSpec((B, blk), lambda i: (0, i)),   # x tile
            pl.BlockSpec((1, blk), lambda i: (0, i)),   # pe tile (reused across batch)
        ],
        out_specs=pl.BlockSpec((B, blk), lambda i: (0, i)),
        input_output_aliases={0: 0},                    # donate the x slab to the output
        compiler_params=pltpu.CompilerParams(
            dimension_semantics=("parallel",)),         # seq tiles split across TCs on v7x
    )(x2, pe2)

    return out2.reshape(B, S, D).transpose(1, 0, 2)


# --------------------------- pure-JAX reference -----------------------------
def reference(x, pe_buffer):
    S = x.shape[0]
    return x + pe_buffer[:S][:, None, :]   # dropout = identity in eval mode


# ---------------------------------- main ------------------------------------
if __name__ == "__main__":
    key = jax.random.PRNGKey(0)

    # x is (seq_len, batch, d_model) -- same axis convention the PyTorch forward assumes.
    x = jax.random.normal(key, (SEQ, BATCH, D_MODEL), dtype=jnp.float32)
    pe_buffer = make_pe_buffer(D_MODEL, MAX_LEN)

    out = jax.block_until_ready(positional_encoding(x, pe_buffer))

    ref = reference(x, pe_buffer)
    assert out.shape == (SEQ, BATCH, D_MODEL)
    assert jnp.allclose(out, ref, rtol=1e-6, atol=1e-6), "mismatch vs JAX reference"

    print("KERNEL_OK")
</pallas_src>

<mosaic_0001>
module attributes {stable_mosaic.version = 11 : i64} {
  func.func @positional_encoding_kernel(%arg0: i32, %arg1: memref<2x256xf32, #tpu.memory_space<vmem>>, %arg2: memref<1x256xf32, #tpu.memory_space<vmem>>, %arg3: memref<2x256xf32, #tpu.memory_space<vmem>>) attributes {dimension_semantics = [#tpu.dimension_semantics<parallel>], iteration_bounds = array<i64: 1>, scalar_prefetch = 0 : i64, scratch_operands = 0 : i64, tpu.core_type = #tpu.core_type<tc>, window_params = [{transform_indices = @transform_0, window_bounds = array<i64: 2, 256>}, {transform_indices = @transform_1, window_bounds = array<i64: 1, 256>}, {transform_indices = @transform_2, window_bounds = array<i64: 2, 256>}]} {
    %c0 = arith.constant 0 : index
    %c0_0 = arith.constant 0 : index
    %0 = vector.load %arg1[%c0, %c0_0] : memref<2x256xf32, #tpu.memory_space<vmem>>, vector<2x256xf32>
    %c0_1 = arith.constant 0 : index
    %c0_2 = arith.constant 0 : index
    %1 = vector.load %arg2[%c0_1, %c0_2] : memref<1x256xf32, #tpu.memory_space<vmem>>, vector<1x256xf32>
    %2 = vector.broadcast %1 : vector<1x256xf32> to vector<2x256xf32>
    %3 = arith.addf %0, %2 : vector<2x256xf32>
    %c0_3 = arith.constant 0 : index
    %c0_4 = arith.constant 0 : index
    %4 = vector.load %arg3[%c0_3, %c0_4] : memref<2x256xf32, #tpu.memory_space<vmem>>, vector<2x256xf32>
    tpu.vector_store %arg3[%c0_3, %c0_4], %3 {strides = array<i32>} : memref<2x256xf32, #tpu.memory_space<vmem>>, vector<2x256xf32>,
    return
  }
  func.func @transform_0(%arg0: i32) -> (i32, i32) {
    %c0_i32 = arith.constant 0 : i32
    %c0_i32_0 = arith.constant 0 : i32
    return %c0_i32, %arg0 : i32, i32
  }
  func.func @transform_1(%arg0: i32) -> (i32, i32) {
    %c0_i32 = arith.constant 0 : i32
    %c0_i32_0 = arith.constant 0 : i32
    return %c0_i32, %arg0 : i32, i32
  }
  func.func @transform_2(%arg0: i32) -> (i32, i32) {
    %c0_i32 = arith.constant 0 : i32
    %c0_i32_0 = arith.constant 0 : i32
    return %c0_i32, %arg0 : i32, i32
  }
}

</mosaic_0001>

<bundles_post_ra>
// kernel: positional_encoding.1
= control target key start
LH: loop header
LB: loop body
LE: loop exit
PB: predicated region body
PF: predicated region fallthrough
CT: control target
= control target key end

     0   :  { %v14_v0 = vlaneseq  ;;  %v38_v1 = vmov 1983009808   ;;  %s63_s1 = inlined_call_operand.vmem [shape: f32[1,256], index: 1, kind: input, shape index: {}]   ;;  %s64_s0 = inlined_call_operand.vmem [shape: f32[2,256], index: 0, kind: input, shape index: {}, may-alias: {0,2}]   ;;  %s65_s2 = inlined_call_operand.vmem [shape: f32[2,256], index: 2, kind: output, shape index: {}, may-alias: {0,2}]  }
   0x1   :  { %v24_v2 = vunpack.c.l.s4 %v38_v1  ;;  %v12_v4 = vld [vmem:[%s63_s1] sm:$0x3] }
   0x2   :  { %v15_v3 = vshrl.u32 %v14_v0, 7  ;;  %v11_v12 = vld [vmem:[%s64_s0] sm:$0xf] }
   0x3   :  { %v25_v5 = vunpack.c.0.s8 %v24_v2 }
   0x4   :  { %v16_v6 = vsub.s32 0, %v15_v3  ;;  %v20_v7 = vsub.s32 1, %v15_v3 }
   0x5   :  { %v28_v10 = vsub.s32 %v25_v5, %v15_v3 }
   0x6   :  { %v17_v8 = vrot.slane %v12_v4, %v16_v6  ;;  %v21_v9 = vrot.slane %v12_v4, %v20_v7 }
   0x8   :  { %v22_v11 = vcombine.low %v17_v8, %v21_v9 }
   0xa   :  { %v29_v13 = vrot.slane %v22_v11, %v28_v10 }
   0xc   :  { %v31_v14 = vadd.f32 %v29_v13, %v11_v12 }
   0xe   :  { %32 = vst [vmem:[%s65_s2] sm:$0xf] %v31_v14 }

</bundles_post_ra>
